<compile_context>
chip_gen: v7x
topology: tpu7x:2x2x1
jax: 0.10.0
libtpu: 0.0.40
codegen_flags: <defaults>
</compile_context>

<pallas_src>
import jax
import jax.numpy as jnp
from jax.experimental import pallas as pl
from jax.experimental.pallas import tpu as pltpu

FRAME_DIM = 80            # per-frame feature size fixed by the module
SF_DIM = 3 * FRAME_DIM    # 240: one stride-3 "super-frame" row
IDIM = 8 * FRAME_DIM      # 640: Linear input dim


# ----------------------------- Pallas kernel ------------------------------ #
def _superframe_kernel(x_ref, halo_ref, w_ref, b_ref, o_ref):
    """Stacking + projection + GLU on one (batch-pair, row-tile) block.

    x_ref:    (2, 1, TM, 240) f32  -- [0] = first GLU half, [1] = gate half
    halo_ref: (2, 1, 8, 240)  f32  -- next 8 super-frames (only rows 0..1 used)
    w_ref:    (240, 3N) bf16       -- folded weight [W0 | W1 | W2pad] (grid-invariant)
    b_ref:    (1, N)    f32        -- bias (grid-invariant)
    o_ref:    (1, TM, N) f32
    """
    tm = o_ref.shape[1]
    n = o_ref.shape[2]
    w = w_ref[...]
    b = b_ref[...]

    def proj(idx):
        # Cast to bf16 right before the MXU; accumulate in f32.
        xm = x_ref[idx, 0].astype(jnp.bfloat16)          # (tm, 240)
        xh = halo_ref[idx, 0][0:2, :].astype(jnp.bfloat16)  # (2, 240)
        x = jnp.concatenate([xm, xh], axis=0)            # (tm + 2, 240)
        y = jnp.dot(x, w, preferred_element_type=jnp.float32)  # (tm + 2, 3n)
        # stacked[t] @ W == F3[t] @ W0 + F3[t+1] @ W1 + F3[t+2] @ W2pad
        return (y[0:tm, 0:n]
                + y[1:tm + 1, n:2 * n]
                + y[2:tm + 2, 2 * n:3 * n]) + b

    ya = proj(0)                       # first batch half
    yb = proj(1)                       # gate (second) batch half
    o_ref[0] = ya * jax.nn.sigmoid(yb)


def _choose_row_tile(tp, tm_max=2048, granule=16):
    """Row tile: multiple of 16, as large as useful up to tm_max.

    No forced splitting into >= 2 grid steps: v5e/v6e have a single TensorCore so
    extra steps are pure per-step overhead, and on v7x real workloads already give
    >= 2 parallel grid steps via the (B//2, nt) grid.  (tm_max can be raised to
    4096 on v7x if T' is huge; VMEM stays well under the 48 MiB cap.)
    """
    tm = min(tm_max, pl.cdiv(tp, granule) * granule)
    return max(tm, granule)


def _superframe_pallas(src4, wcat, bias, *, tp, tm_max):
    """src4: (2, half, Tq, 240) f32, wcat: (240, 3N) bf16, bias: (1, N) f32
    -> (half, T', N) f32  with out[h, t] = (x_h[t]@W+b) * sigmoid((x_{h+half}[t]@W+b))."""
    _, half, tq, _ = src4.shape
    n = bias.shape[1]
    tm = _choose_row_tile(tp, tm_max)
    nt = pl.cdiv(tp, tm)
    halo_last = pl.cdiv(tq, 8) - 1     # last valid 8-row halo block index

    def main_map(h, i):
        return (0, h, i, 0)

    def halo_map(h, i):
        # First 2 rows of this block are super-frames (i+1)*tm and (i+1)*tm + 1.
        # The clamp keeps the block start in-bounds; clamped (wrong) data only
        # ever feeds output rows that are masked away (past T').
        return (0, h, jnp.minimum((i + 1) * (tm // 8), halo_last), 0)

    return pl.pallas_call(
        _superframe_kernel,
        out_shape=jax.ShapeDtypeStruct((half, tp, n), jnp.float32),
        grid_spec=pltpu.PrefetchScalarGridSpec(
            num_scalar_prefetch=0,
            grid=(half, nt),
            in_specs=[
                pl.BlockSpec((2, 1, tm, SF_DIM), main_map),           # both GLU halves
                pl.BlockSpec((2, 1, 8, SF_DIM), halo_map),            # 2-row overlap (+6 pad)
                pl.BlockSpec((SF_DIM, 3 * n), lambda h, i: (0, 0)),   # folded weight (resident)
                pl.BlockSpec((1, n), lambda h, i: (0, 0)),            # bias (resident)
            ],
            out_specs=pl.BlockSpec((1, tm, n), lambda h, i: (h, i, 0)),
        ),
        compiler_params=pltpu.CompilerParams(
            dimension_semantics=("parallel", "parallel"),
            vmem_limit_bytes=48 * 1024 * 1024,
        ),
    )(src4, src4, wcat, bias)


# ------------------------------ forward glue ------------------------------ #
def superframe_forward(src_tokens, src_lengths, w, bias, *, tm_max=2048):
    """Matches SuperFrame.forward. Returns ((T', B//2, odim) f32, out_lengths).

    w is the Linear weight pre-transposed to (640, odim); bias is (odim,).
    """
    B, T, F = src_tokens.shape
    assert F == FRAME_DIM, f"feature dim must be {FRAME_DIM} (module hardcodes idim=640)"
    assert B % 2 == 0, "GLU(dim=1) needs an even batch (as in the PyTorch code)"
    out_lengths = src_lengths // 3 - 2

    tq = T // 3          # number of stride-3 super-frames
    tp = tq - 2          # output time steps T'
    assert tp >= 1, "need at least 9 input frames"
    half = B // 2
    n = w.shape[1]

    # (B, T, 80) -> (2, half, Tq, 240).  Pure bitcast / view when T % 3 == 0.
    # TODO(synk): when T % 3 != 0 the tail slice forces one copy of the input;
    # could be avoided with flat per-row addressing of the raw (B, T, 80) array.
    src4 = src_tokens[:, : 3 * tq, :].reshape(2, half, tq, SF_DIM)

    # Fold the 640-wide weight into (240, 3N): column group s multiplies super-frame
    # F3[t+s]; the last 80 rows of group 2 are zero (frame 3t+8 is dropped).
    w = w.astype(jnp.float32)
    w2 = jnp.concatenate([w[2 * SF_DIM:IDIM], jnp.zeros((FRAME_DIM, n), w.dtype)], axis=0)
    wcat = jnp.concatenate([w[0:SF_DIM], w[SF_DIM:2 * SF_DIM], w2], axis=1)
    wcat = wcat.astype(jnp.bfloat16)

    out = _superframe_pallas(src4, wcat, bias.reshape(1, n).astype(jnp.float32),
                             tp=tp, tm_max=tm_max)            # (half, T', odim)

    # Only the small odim-wide output is transposed back to (T', half, odim).
    # TODO(synk): fold this transpose into out_specs (or fold rows into lanes for
    # a lane-dense output) if odim grows large; negligible at small odim.
    return jnp.transpose(out, (1, 0, 2)), out_lengths


def superframe_reference(src_tokens, src_lengths, w, bias):
    """Pure-JAX f32 reference, op-for-op mirror of the PyTorch module."""
    out_lengths = src_lengths // 3 - 2
    n_frames = src_tokens.shape[1] // 3 * 3
    x = src_tokens[:, :n_frames, :]
    x = jnp.concatenate((x[:, ::3, :], x[:, 1::3, :], x[:, 2::3, :]), axis=-1)
    x = jnp.concatenate((x[:, 0:-2, :], x[:, 1:-1, :], x[:, 2:, :]), axis=-1)
    x = x[:, :, : x.shape[-1] - 80]
    x = jnp.transpose(x, (1, 0, 2))
    y = x @ w + bias
    half = y.shape[1] // 2
    return y[:, :half, :] * jax.nn.sigmoid(y[:, half:, :]), out_lengths


# --------------------------------- main ----------------------------------- #
if __name__ == "__main__":
    odim = 32
    B, T, F = 4, 77, 80          # F must be 80 so that the stacking yields 640

    key = jax.random.PRNGKey(0)
    k_w, k_b, k_x = jax.random.split(key, 3)

    # xavier_normal_ on the PyTorch (odim, 640) weight, stored pre-transposed as
    # (640, odim); small non-zero bias to exercise the bias path.
    std = (2.0 / (IDIM + odim)) ** 0.5
    w = jax.random.normal(k_w, (IDIM, odim), dtype=jnp.float32) * std
    bias = jax.random.normal(k_b, (odim,), dtype=jnp.float32) * 0.1

    src_tokens = jax.random.normal(k_x, (B, T, F), dtype=jnp.float32)
    src_lengths = jnp.array([77, 60, 45, 77], dtype=jnp.int32)

    fwd = jax.jit(superframe_forward, static_argnames=("tm_max",))
    x_out, out_lengths = fwd(src_tokens, src_lengths, w, bias)
    x_out = jax.block_until_ready(x_out)
    out_lengths = jax.block_until_ready(out_lengths)

    # Sanity check against the pure-JAX f32 reference (loose tol: bf16 matmul).
    x_ref, len_ref = superframe_reference(src_tokens, src_lengths, w, bias)
    tp = T // 3 - 2
    assert x_out.shape == (tp, B // 2, odim), x_out.shape
    max_err = float(jnp.max(jnp.abs(x_out - x_ref)))
    assert jnp.allclose(x_out, x_ref, atol=7.5e-2, rtol=5e-2), max_err
    assert jnp.array_equal(out_lengths, len_ref)

    # Also exercise the multi-tile path (halo crossing tiles, ragged last tile,
    # clamped halo block index) with a tiny forced row tile.
    x_out2, _ = fwd(src_tokens, src_lengths, w, bias, tm_max=16)
    x_out2 = jax.block_until_ready(x_out2)
    max_err2 = float(jnp.max(jnp.abs(x_out2 - x_ref)))
    assert jnp.allclose(x_out2, x_ref, atol=7.5e-2, rtol=5e-2), max_err2

    print("KERNEL_OK")
</pallas_src>

<mosaic_0001>
module attributes {stable_mosaic.version = 11 : i64} {
  func.func @_superframe_kernel(%arg0: i32, %arg1: i32, %arg2: memref<2x1x32x240xf32, #tpu.memory_space<vmem>>, %arg3: memref<2x1x8x240xf32, #tpu.memory_space<vmem>>, %arg4: memref<240x96xbf16, #tpu.memory_space<vmem>>, %arg5: memref<1x32xf32, #tpu.memory_space<vmem>>, %arg6: memref<1x32x32xf32, #tpu.memory_space<vmem>>) attributes {dimension_semantics = [#tpu.dimension_semantics<parallel>, #tpu.dimension_semantics<parallel>], iteration_bounds = array<i64: 2, 1>, scalar_prefetch = 0 : i64, scratch_operands = 0 : i64, tpu.core_type = #tpu.core_type<tc>, window_params = [{transform_indices = @transform_0, window_bounds = array<i64: 2, 1, 32, 240>}, {transform_indices = @transform_1, window_bounds = array<i64: 2, 1, 8, 240>}, {pipeline_mode = #tpu.pipeline_mode<synchronous>, transform_indices = @transform_2, window_bounds = array<i64: 240, 96>}, {pipeline_mode = #tpu.pipeline_mode<synchronous>, transform_indices = @transform_3, window_bounds = array<i64: 1, 32>}, {transform_indices = @transform_4, window_bounds = array<i64: 1, 32, 32>}]} {
    %c0 = arith.constant 0 : index
    %c0_0 = arith.constant 0 : index
    %0 = vector.load %arg4[%c0, %c0_0] : memref<240x96xbf16, #tpu.memory_space<vmem>>, vector<240x96xbf16>
    %c0_1 = arith.constant 0 : index
    %c0_2 = arith.constant 0 : index
    %1 = vector.load %arg5[%c0_1, %c0_2] : memref<1x32xf32, #tpu.memory_space<vmem>>, vector<1x32xf32>
    %c0_3 = arith.constant 0 : index
    %c0_4 = arith.constant 0 : index
    %c0_5 = arith.constant 0 : index
    %c0_6 = arith.constant 0 : index
    %2 = vector.load %arg2[%c0_3, %c0_4, %c0_5, %c0_6] : memref<2x1x32x240xf32, #tpu.memory_space<vmem>>, vector<1x1x32x240xf32>
    %3 = vector.shape_cast %2 : vector<1x1x32x240xf32> to vector<32x240xf32>
    %4 = arith.truncf %3 : vector<32x240xf32> to vector<32x240xbf16>
    %c0_7 = arith.constant 0 : index
    %c0_8 = arith.constant 0 : index
    %c0_9 = arith.constant 0 : index
    %c0_10 = arith.constant 0 : index
    %5 = vector.load %arg3[%c0_7, %c0_8, %c0_9, %c0_10] : memref<2x1x8x240xf32, #tpu.memory_space<vmem>>, vector<1x1x8x240xf32>
    %6 = vector.shape_cast %5 : vector<1x1x8x240xf32> to vector<8x240xf32>
    %7 = vector.extract_strided_slice %6 {offsets = [0, 0], sizes = [2, 240], strides = [1, 1]} : vector<8x240xf32> to vector<2x240xf32>
    %8 = arith.truncf %7 : vector<2x240xf32> to vector<2x240xbf16>
    %9 = tpu.concatenate %4, %8 in 0 : vector<32x240xbf16>, vector<2x240xbf16> -> vector<34x240xbf16>
    %cst = arith.constant dense<0.000000e+00> : vector<34x96xf32>
    %10 = tpu.matmul %9, %0, %cst {dimension_numbers = #tpu.dot_dimension_numbers<[1], [0], [0], [1], [0, 0, 1, 1], [], []>} : vector<34x240xbf16>, vector<240x96xbf16>, vector<34x96xf32> -> vector<34x96xf32>
    %11 = vector.extract_strided_slice %10 {offsets = [0, 0], sizes = [32, 32], strides = [1, 1]} : vector<34x96xf32> to vector<32x32xf32>
    %12 = vector.extract_strided_slice %10 {offsets = [1, 32], sizes = [32, 32], strides = [1, 1]} : vector<34x96xf32> to vector<32x32xf32>
    %13 = arith.addf %11, %12 : vector<32x32xf32>
    %14 = vector.extract_strided_slice %10 {offsets = [2, 64], sizes = [32, 32], strides = [1, 1]} : vector<34x96xf32> to vector<32x32xf32>
    %15 = arith.addf %13, %14 : vector<32x32xf32>
    %16 = vector.broadcast %1 : vector<1x32xf32> to vector<32x32xf32>
    %17 = arith.addf %15, %16 : vector<32x32xf32>
    %c1 = arith.constant 1 : index
    %c0_11 = arith.constant 0 : index
    %c0_12 = arith.constant 0 : index
    %c0_13 = arith.constant 0 : index
    %18 = vector.load %arg2[%c1, %c0_11, %c0_12, %c0_13] : memref<2x1x32x240xf32, #tpu.memory_space<vmem>>, vector<1x1x32x240xf32>
    %19 = vector.shape_cast %18 : vector<1x1x32x240xf32> to vector<32x240xf32>
    %20 = arith.truncf %19 : vector<32x240xf32> to vector<32x240xbf16>
    %c1_14 = arith.constant 1 : index
    %c0_15 = arith.constant 0 : index
    %c0_16 = arith.constant 0 : index
    %c0_17 = arith.constant 0 : index
    %21 = vector.load %arg3[%c1_14, %c0_15, %c0_16, %c0_17] : memref<2x1x8x240xf32, #tpu.memory_space<vmem>>, vector<1x1x8x240xf32>
    %22 = vector.shape_cast %21 : vector<1x1x8x240xf32> to vector<8x240xf32>
    %23 = vector.extract_strided_slice %22 {offsets = [0, 0], sizes = [2, 240], strides = [1, 1]} : vector<8x240xf32> to vector<2x240xf32>
    %24 = arith.truncf %23 : vector<2x240xf32> to vector<2x240xbf16>
    %25 = tpu.concatenate %20, %24 in 0 : vector<32x240xbf16>, vector<2x240xbf16> -> vector<34x240xbf16>
    %cst_18 = arith.constant dense<0.000000e+00> : vector<34x96xf32>
    %26 = tpu.matmul %25, %0, %cst_18 {dimension_numbers = #tpu.dot_dimension_numbers<[1], [0], [0], [1], [0, 0, 1, 1], [], []>} : vector<34x240xbf16>, vector<240x96xbf16>, vector<34x96xf32> -> vector<34x96xf32>
    %27 = vector.extract_strided_slice %26 {offsets = [0, 0], sizes = [32, 32], strides = [1, 1]} : vector<34x96xf32> to vector<32x32xf32>
    %28 = vector.extract_strided_slice %26 {offsets = [1, 32], sizes = [32, 32], strides = [1, 1]} : vector<34x96xf32> to vector<32x32xf32>
    %29 = arith.addf %27, %28 : vector<32x32xf32>
    %30 = vector.extract_strided_slice %26 {offsets = [2, 64], sizes = [32, 32], strides = [1, 1]} : vector<34x96xf32> to vector<32x32xf32>
    %31 = arith.addf %29, %30 : vector<32x32xf32>
    %32 = vector.broadcast %1 : vector<1x32xf32> to vector<32x32xf32>
    %33 = arith.addf %31, %32 : vector<32x32xf32>
    %34 = arith.negf %33 : vector<32x32xf32>
    %35 = math.exp %34 : vector<32x32xf32>
    %cst_19 = arith.constant 1.000000e+00 : f32
    %36 = vector.broadcast %cst_19 : f32 to vector<32x32xf32>
    %37 = arith.addf %36, %35 : vector<32x32xf32>
    %38 = arith.divf %36, %37 : vector<32x32xf32>
    %39 = arith.mulf %17, %38 : vector<32x32xf32>
    %c0_20 = arith.constant 0 : index
    %c0_21 = arith.constant 0 : index
    %c0_22 = arith.constant 0 : index
    %40 = vector.load %arg6[%c0_20, %c0_21, %c0_22] : memref<1x32x32xf32, #tpu.memory_space<vmem>>, vector<1x32x32xf32>
    %41 = vector.shape_cast %40 : vector<1x32x32xf32> to vector<32x32xf32>
    %42 = vector.shape_cast %39 : vector<32x32xf32> to vector<1x32x32xf32>
    tpu.vector_store %arg6[%c0_20, %c0_21, %c0_22], %42 {strides = array<i32>} : memref<1x32x32xf32, #tpu.memory_space<vmem>>, vector<1x32x32xf32>,
    return
  }
  func.func @transform_0(%arg0: i32, %arg1: i32) -> (i32, i32, i32, i32) {
    %c0_i32 = arith.constant 0 : i32
    %c0_i32_0 = arith.constant 0 : i32
    %c0_i32_1 = arith.constant 0 : i32
    return %c0_i32, %arg0, %arg1, %c0_i32_0 : i32, i32, i32, i32
  }
  func.func @transform_1(%arg0: i32, %arg1: i32) -> (i32, i32, i32, i32) {
    %c1_i32 = arith.constant 1 : i32
    %0 = arith.addi %arg1, %c1_i32 : i32
    %c4_i32 = arith.constant 4 : i32
    %1 = arith.muli %0, %c4_i32 : i32
    %c3_i32 = arith.constant 3 : i32
    %2 = arith.minsi %1, %c3_i32 : i32
    %c0_i32 = arith.constant 0 : i32
    %c0_i32_0 = arith.constant 0 : i32
    %c0_i32_1 = arith.constant 0 : i32
    return %c0_i32, %arg0, %2, %c0_i32_0 : i32, i32, i32, i32
  }
  func.func @transform_2(%arg0: i32, %arg1: i32) -> (i32, i32) {
    %c0_i32 = arith.constant 0 : i32
    %c0_i32_0 = arith.constant 0 : i32
    %c0_i32_1 = arith.constant 0 : i32
    return %c0_i32, %c0_i32_0 : i32, i32
  }
  func.func @transform_3(%arg0: i32, %arg1: i32) -> (i32, i32) {
    %c0_i32 = arith.constant 0 : i32
    %c0_i32_0 = arith.constant 0 : i32
    %c0_i32_1 = arith.constant 0 : i32
    return %c0_i32, %c0_i32_0 : i32, i32
  }
  func.func @transform_4(%arg0: i32, %arg1: i32) -> (i32, i32, i32) {
    %c0_i32 = arith.constant 0 : i32
    %c0_i32_0 = arith.constant 0 : i32
    return %arg0, %arg1, %c0_i32 : i32, i32, i32
  }
}

</mosaic_0001>

<bundles_post_ra>
// kernel: superframe_forward.1
= control target key start
LH: loop header
LB: loop body
LE: loop exit
PB: predicated region body
PF: predicated region fallthrough
CT: control target
= control target key end

     0   :  { %s1302_s15 = smov 0   ;;  %s1304_s16 = smov 0   ;;  %s1593_s0 = inlined_call_operand.vmem [shape: f32[2,2,25,240], index: 0, kind: input, shape index: {}, may-alias: {0,1}]   ;;  %s1594_s1 = inlined_call_operand.vmem [shape: f32[2,2,25,240], index: 1, kind: input, shape index: {}, may-alias: {0,1}]   ;;  %s1595_s2 = inlined_call_operand.vmem [shape: bf16[240,96], index: 2, kind: input, shape index: {}]   ;;  %s1596_s3 = inlined_call_operand.vmem [shape: f32[1,32], index: 3, kind: input, shape index: {}]   ;;  %s1597_s4 = inlined_call_operand.vmem [shape: f32[2,23,32], index: 4, kind: output, shape index: {}]  }
   0x1   :  { %s1306_s17 = smov 0   ;;  %s1308_s18 = smov 0  }
   0x2   :  { %s1310_s19 = smov 0  }
   0x3 LB: > { %s26_s20 = sadd.s32 1, %s1264_s18  ;;  %s1043_s21 = sadd.s32 4294967295, %s1268_s19   ;;  %s1268_s19 = sphi %s1310_s19, %s14_s19   ;;  %s1264_s18 = sphi %s1308_s18, %s1603_s18   ;;  %s1260_s17 = sphi %s1306_s17, %s1602_s17   ;;  %s1256_s16 = sphi %s1304_s16, %s1601_s16   ;;  %s1252_s15 = sphi %s1302_s15, %s1600_s15  }
   0x4   : > { %p28_p0 = scmp.ge.s32.totalorder %s26_s20, 2  ;;  %p42_p1 = scmp.ne.s32.totalorder %s1256_s16, %s1252_s15 }
   0x5   : > { %p43_p2 = scmp.eq.s32.totalorder %s1268_s19, 0  ;;  %p152_p4 = scmp.eq.s32.totalorder %s1043_s21, 1 }
   0x6   : > { %s1605_s20 = smov (%p28_p0, %s26_s20), 0  ;;  %s35_s24 = sadd.s32 1, %s1256_s16 }
   0x7   : > { %p1334_p3 = por %p43_p2, %p42_p1  ;;  %s30_s23 = ssub.s32 %s1264_s18, %s1605_s20 }
   0x8   : > { %p33_p5 = scmp.eq.s32.totalorder %s30_s23, 0  ;;  %p1341_p6 = por %p152_p4, %p42_p1 }
   0x9   : > { %p1046_p7 = scmp.ge.s32.totalorder %s1268_s19, 2 }
   0xa   : > { %s1346_s26 = scalar_select %p33_p5, %s1256_s16, %s35_s24  }
   0xb   : > { %180 = sbr.rel (%p1046_p7) target bundleno = 37 (0x25), region = 24 }
  0x12   : > { %183 = sbr.rel (!%p1334_p3) target bundleno = 30 (0x1e), region = 28  ;;  %s185_s27 = sand.u32 (%p1334_p3), 1, %s1256_s16  }
  0x13   : > { %s1103_s28 = sshll.u32 (%p1334_p3), %s1264_s18, 6  ;;  %s1047_s29 = sshll.u32 (%p1334_p3), %s185_s27, 7 }
  0x14   : > { %s1356_s6 = scalar_lea.vmem (%p1334_p3), %s1593_s0, %s1103_s28  ;;  %s187_s7 = scalar_lea.vmem (%p1334_p3), [#allocation2], %s1047_s29 }
  0x15   : > { %v206_v0 = vld [vmem:[%s1356_s6] sm:$0xff] (%p1334_p3)  ;;  %v208_v1 = vld [vmem:[%s1356_s6 + $0x8] sm:$0xff] (%p1334_p3)  ;;  %v210_v2 = vld [vmem:[%s1356_s6 + $0x10] sm:$0xff] (%p1334_p3) }
  0x16   : > { %207 = vst [vmem:[%s187_s7] sm:$0xff] (%p1334_p3), %v206_v0  ;;  %209 = vst [vmem:[%s187_s7 + $0x8] sm:$0xff] (%p1334_p3), %v208_v1  ;;  %v212_v3 = vld [vmem:[%s1356_s6 + $0x18] sm:$0xff] (%p1334_p3)  ;;  %v214_v4 = vld [vmem:[%s1356_s6 + $0x20] sm:$0xff] (%p1334_p3) }
  0x17   : > { %211 = vst [vmem:[%s187_s7 + $0x10] sm:$0xff] (%p1334_p3), %v210_v2  ;;  %v216_v5 = vld [vmem:[%s1356_s6 + $0x28] sm:$0xff] (%p1334_p3)  ;;  %213 = vst [vmem:[%s187_s7 + $0x18] sm:$0xff] (%p1334_p3), %v212_v3  ;;  %v218_v6 = vld [vmem:[%s1356_s6 + $0x30] sm:$0xff] (%p1334_p3) }
  0x18   : > { %215 = vst [vmem:[%s187_s7 + $0x20] sm:$0xff] (%p1334_p3), %v214_v4  ;;  %217 = vst [vmem:[%s187_s7 + $0x28] sm:$0xff] (%p1334_p3), %v216_v5  ;;  %v220_v7 = vld [vmem:[%s1356_s6 + $0x38] sm:$0xff] (%p1334_p3)  ;;  %v222_v8 = vld [vmem:[%s1356_s6 + $0x80] sm:$0xff] (%p1334_p3) }
  0x19   : > { %219 = vst [vmem:[%s187_s7 + $0x30] sm:$0xff] %v218_v6  ;;  %221 = vst [vmem:[%s187_s7 + $0x38] sm:$0xff] %v220_v7  ;;  %v224_v9 = vld [vmem:[%s1356_s6 + $0x88] sm:$0xff]  ;;  %v226_v10 = vld [vmem:[%s1356_s6 + $0x90] sm:$0xff] }
  0x1a   : > { %223 = vst [vmem:[%s187_s7 + $0x40] sm:$0xff] %v222_v8  ;;  %v228_v11 = vld [vmem:[%s1356_s6 + $0x98] sm:$0xff]  ;;  %225 = vst [vmem:[%s187_s7 + $0x48] sm:$0xff] %v224_v9  ;;  %v230_v12 = vld [vmem:[%s1356_s6 + $0xa0] sm:$0xff] }
  0x1b   : > { %227 = vst [vmem:[%s187_s7 + $0x50] sm:$0xff] %v226_v10  ;;  %229 = vst [vmem:[%s187_s7 + $0x58] sm:$0xff] %v228_v11  ;;  %v232_v13 = vld [vmem:[%s1356_s6 + $0xa8] sm:$0xff]  ;;  %v234_v14 = vld [vmem:[%s1356_s6 + $0xb0] sm:$0xff] }
  0x1c   : > { %231 = vst [vmem:[%s187_s7 + $0x60] sm:$0xff] %v230_v12  ;;  %233 = vst [vmem:[%s187_s7 + $0x68] sm:$0xff] %v232_v13  ;;  %v236_v15 = vld [vmem:[%s1356_s6 + $0xb8] sm:$0xff] }
  0x1d   : > { %235 = vst [vmem:[%s187_s7 + $0x70] sm:$0xff] %v234_v14  ;;  %237 = vst [vmem:[%s187_s7 + $0x78] sm:$0xff] %v236_v15 }
  0x1e PF: > { %243 = sbr.rel (!%p1334_p3) target bundleno = 37 (0x25), region = 51  ;;  %s245_s8 = sand.u32 (%p1334_p3), 1, %s1256_s16  }
  0x1f   : > { %s1106_s9 = sshll.u32 (%p1334_p3), %s1264_s18, 6  ;;  %s1050_s10 = sshll.u32 (%p1334_p3), %s245_s8, 5 }
  0x20   : > { %s1105_s11 = sadd.s32 (%p1334_p3), 48, %s1106_s9  ;;  %s247_s21 = scalar_lea.vmem (%p1334_p3), [#allocation3], %s1050_s10 }
  0x21   : > { %s256_s14 = scalar_lea.vmem (%p1334_p3), %s1594_s1, %s1105_s11 }
  0x22   : > { %v269_v16 = vld [vmem:[%s256_s14] sm:$0xff] (%p1334_p3)  ;;  %v271_v17 = vld [vmem:[%s256_s14 + $0x8] sm:$0xff] (%p1334_p3) }
  0x23   : > { %v273_v18 = vld [vmem:[%s256_s14 + $0x80] sm:$0xff] (%p1334_p3)  ;;  %270 = vst [vmem:[%s247_s21] sm:$0xff] (%p1334_p3), %v269_v16  ;;  %272 = vst [vmem:[%s247_s21 + $0x8] sm:$0xff] (%p1334_p3), %v271_v17  ;;  %v275_v19 = vld [vmem:[%s256_s14 + $0x88] sm:$0xff] (%p1334_p3) }
  0x24   : > { %274 = vst [vmem:[%s247_s21 + $0x10] sm:$0xff] (%p1334_p3), %v273_v18  ;;  %276 = vst [vmem:[%s247_s21 + $0x18] sm:$0xff] (%p1334_p3), %v275_v19 }
  0x25 PF: > { %p1053_p8 = scmp.ge.s32.totalorder %s1268_s19, 1  ;;  %p281_p9 = scmp.lt.s32.totalorder %s1268_s19, 3 }
  0x27   : > { %p282_p10 = pnand %p1053_p8, %p281_p9 }
  0x28   : > { %v1183_v20 = vld [vmem:[%s1595_s2] sm:$0xff] (!%p282_p10)   ;;  %v1274_v21 = vmov (!%p282_p10), 0   ;;  %v1184_v22 = vld [vmem:[%s1595_s2 + $0x8] sm:$0xff] (!%p282_p10)   ;;  %v1185_v23 = vld [vmem:[%s1595_s2 + $0x10] sm:$0xff] (!%p282_p10)   ;;  %s288_s30 = sand.u32 (!%p282_p10), 1, %s1252_s15   ;;  %vm469_vm0 = vcmask (!%p282_p10), 916480  }
  0x29   : > { %285 = sbr.rel (%p282_p10) target bundleno = 491 (0x1eb), region = 74  ;;  %629 = vmatprep.subr.bf16.mxu1 (!%p282_p10), %v1274_v21  ;;  %479 = vmatprep.subr.bf16.mxu0 (!%p282_p10), %v1274_v21  ;;  %s1054_s5 = sshll.u32 (!%p282_p10), %s288_s30, 7  ;;  %v1186_v24 = vld [vmem:[%s1595_s2 + $0x18] sm:$0xff] (!%p282_p10)   ;;  %v1187_v25 = vld [vmem:[%s1595_s2 + $0x20] sm:$0xff] (!%p282_p10)   ;;  %v1188_v30 = vld [vmem:[%s1595_s2 + $0x28] sm:$0xff] (!%p282_p10)   ;;  %vm540_vm1 = vcmask (!%p282_p10), 1046528  }
  0x2a   : > { %630 = vmatpush1.bf16.msra.mxu1 (!%p282_p10), %v1183_v20  ;;  %480 = vmatpush1.bf16.msra.mxu0 (!%p282_p10), %v1183_v20  ;;  %s1411_s10 = scalar_lea.vmem (!%p282_p10), [#allocation2], %s1054_s5  ;;  %v1189_v33 = vld [vmem:[%s1595_s2 + $0x30] sm:$0xff] (!%p282_p10)   ;;  %v1190_v34 = vld [vmem:[%s1595_s2 + $0x38] sm:$0xff] (!%p282_p10)   ;;  %v1191_v35 = vld [vmem:[%s1595_s2 + $0x40] sm:$0xff] (!%p282_p10)   ;;  %s1479_s21 = sshll.u32 (!%p282_p10), %s288_s30, 5  ;;  %vm566_vm2 = vcmask (!%p282_p10), 1045504  }
  0x2b   : > { %631 = vmatprep.subr.bf16.mxu1 (!%p282_p10), %v1274_v21  ;;  %481 = vmatprep.subr.bf16.mxu0 (!%p282_p10), %v1274_v21  ;;  %v1077_v26 = vld [vmem:[%s1411_s10 + $0x48] sm:$0xff] (!%p282_p10)  ;;  %v1079_v27 = vld [vmem:[%s1411_s10 + $0x58] sm:$0xff] (!%p282_p10)  ;;  %v1193_v37 = vld [vmem:[%s1595_s2 + $0x50] sm:$0xff] (!%p282_p10)   ;;  %s297_s22 = scalar_lea.vmem (!%p282_p10), [#allocation3], %s1479_s21  ;;  %s1275_s15 = smov (!%p282_p10), 96   ;;  %vm772_vm3 = vcmask (!%p282_p10), 261120  }
  0x2c   : > { %v612_v28 = vpack.c.bf16 (!%p282_p10), %v1079_v27, %v1077_v26  ;;  %v364_v29 = vld [vmem:[%s1411_s10 + $0x8] sm:$0xff] (!%p282_p10)  ;;  %v366_v31 = vld [vmem:[%s1411_s10 + $0x18] sm:$0xff] (!%p282_p10)  ;;  %v1195_v39 = vld [vmem:[%s1595_s2 + $0x60] sm:$0xff] (!%p282_p10)   ;;  %s1276_s30 = smov (!%p282_p10), 64   ;;  %s1561_s24 = scalar_lea.vmem (!%p282_p10), [#allocation4], %s1479_s21  }
  0x2d   : > { %v372_v32 = vpack.c.bf16 (!%p282_p10), %v366_v31, %v364_v29  ;;  %v1192_v36 = vld [vmem:[%s1595_s2 + $0x48] sm:$0xff] (!%p282_p10)   ;;  %v1194_v38 = vld [vmem:[%s1595_s2 + $0x58] sm:$0xff] (!%p282_p10)   ;;  %v1197_v41 = vld [vmem:[%s1595_s2 + $0x70] sm:$0xff] (!%p282_p10)  }
  0x2e   : > { %632 = vmatpush1.bf16.msra.mxu1 (!%p282_p10), %v1184_v22  ;;  %482 = vmatpush1.bf16.msra.mxu0 (!%p282_p10), %v1184_v22  ;;  %v1196_v40 = vld [vmem:[%s1595_s2 + $0x68] sm:$0xff] (!%p282_p10)   ;;  %v1076_v42 = vld [vmem:[%s1411_s10 + $0x40] sm:$0xff] (!%p282_p10)  ;;  %v1078_v43 = vld [vmem:[%s1411_s10 + $0x50] sm:$0xff] (!%p282_p10) }
  0x2f   : > { %633 = vmatprep.subr.bf16.mxu1 (!%p282_p10), %v1274_v21  ;;  %483 = vmatprep.subr.bf16.mxu0 (!%p282_p10), %v1274_v21  ;;  %v1081_v44 = vld [vmem:[%s1411_s10 + $0x68] sm:$0xff] (!%p282_p10)  ;;  %v363_v45 = vld [vmem:[%s1411_s10] sm:$0xff] (!%p282_p10)  ;;  %v365_v46 = vld [vmem:[%s1411_s10 + $0x10] sm:$0xff] (!%p282_p10)  ;;  %v611_v50 = vpack.c.bf16 (!%p282_p10), %v1078_v43, %v1076_v42 }
  0x30   : > { %1086 = vmatprep.mubr.msk.bf16.mxu1 %vm469_vm0, %v612_v28  ;;  %1072 = vmatprep.mubr.msk.bf16.mxu0 %vm469_vm0, %v372_v32  ;;  %v1083_v47 = vld [vmem:[%s1411_s10 + $0x78] sm:$0xff]  ;;  %v368_v48 = vld [vmem:[%s1411_s10 + $0x28] sm:$0xff]  ;;  %v371_v51 = vpack.c.bf16 %v365_v46, %v363_v45  ;;  %v1080_v54 = vld [vmem:[%s1411_s10 + $0x60] sm:$0xff]  ;;  %s1107_s27 = smul.u32 (%p1341_p6), 24, %s1260_s17  ;;  %s1270_s6 = smov (%p1341_p6), 0  }
  0x31   : > { %v370_v49 = vld [vmem:[%s1411_s10 + $0x38] sm:$0xff]  ;;  %v614_v52 = vpack.c.bf16 %v1083_v47, %v1081_v44  ;;  %v1082_v55 = vld [vmem:[%s1411_s10 + $0x70] sm:$0xff]  ;;  %v367_v56 = vld [vmem:[%s1411_s10 + $0x20] sm:$0xff] }
  0x32   : > { %634 = vmatpush1.bf16.msra.mxu1 %v1185_v23  ;;  %484 = vmatpush1.bf16.msra.mxu0 %v1185_v23  ;;  %v374_v53 = vpack.c.bf16 %v370_v49, %v368_v48  ;;  %v369_v57 = vld [vmem:[%s1411_s10 + $0x30] sm:$0xff]  ;;  %v1085_v58 = vld [vmem:[%s297_s22 + $0x18] sm:$0xff]  ;;  %v376_v59 = vld [vmem:[%s297_s22 + $0x8] sm:$0xff]  ;;  %v613_v60 = vpack.c.bf16 %v1082_v55, %v1080_v54  ;;  %s791_s5 = scalar_lea.vmem (%p1341_p6), %s1597_s4, %s1107_s27  }
  0x33   : > { %635 = vmatprep.subr.bf16.mxu1 %v1274_v21  ;;  %485 = vmatprep.subr.bf16.mxu0 %v1274_v21  ;;  %v373_v61 = vpack.c.bf16 %v369_v57, %v367_v56  ;;  %v619_v62 = vpack.c.bf16 %v1085_v58, %v1085_v58  ;;  %v378_v63 = vpack.c.bf16 %v376_v59, %v376_v59  ;;  %v1084_v0 = vld [vmem:[%s297_s22 + $0x10] sm:$0xff]  ;;  %v375_v1 = vld [vmem:[%s297_s22] sm:$0xff] }
  0x34   : > { %v618_v2 = vpack.c.bf16 %v1084_v0, %v1084_v0  ;;  %v377_v3 = vpack.c.bf16 %v375_v1, %v375_v1 }
  0x36   : > { %636 = vmatpush1.bf16.msra.mxu1 %v1186_v24  ;;  %486 = vmatpush1.bf16.msra.mxu0 %v1186_v24 }
  0x37   : > { %637 = vmatprep.subr.bf16.mxu1 %v1274_v21  ;;  %487 = vmatprep.subr.bf16.mxu0 %v1274_v21 }
  0x3a   : > { %638 = vmatpush1.bf16.msra.mxu1 %v1187_v25  ;;  %488 = vmatpush1.bf16.msra.mxu0 %v1187_v25 }
  0x3b   : > { %639 = vmatprep.subr.bf16.mxu1 %v1274_v21  ;;  %489 = vmatprep.subr.bf16.mxu0 %v1274_v21 }
  0x3e   : > { %640 = vmatpush1.bf16.msra.mxu1 %v1188_v30  ;;  %490 = vmatpush1.bf16.msra.mxu0 %v1188_v30 }
  0x3f   : > { %641 = vmatprep.subr.bf16.mxu1 %v1274_v21  ;;  %491 = vmatprep.subr.bf16.mxu0 %v1274_v21 }
  0x42   : > { %642 = vmatpush1.bf16.msra.mxu1 %v1189_v33  ;;  %492 = vmatpush1.bf16.msra.mxu0 %v1189_v33 }
  0x43   : > { %643 = vmatprep.subr.bf16.mxu1 %v1274_v21  ;;  %493 = vmatprep.subr.bf16.mxu0 %v1274_v21 }
  0x46   : > { %644 = vmatpush1.bf16.msra.mxu1 %v1190_v34  ;;  %494 = vmatpush1.bf16.msra.mxu0 %v1190_v34 }
  0x47   : > { %645 = vmatprep.subr.bf16.mxu1 %v1274_v21  ;;  %495 = vmatprep.subr.bf16.mxu0 %v1274_v21 }
  0x4a   : > { %646 = vmatpush1.bf16.msra.mxu1 %v1191_v35  ;;  %496 = vmatpush1.bf16.msra.mxu0 %v1191_v35 }
  0x4b   : > { %647 = vmatprep.subr.bf16.mxu1 %v1274_v21  ;;  %497 = vmatprep.subr.bf16.mxu0 %v1274_v21 }
  0x4e   : > { %648 = vmatpush1.bf16.msra.mxu1 %v1192_v36  ;;  %498 = vmatpush1.bf16.msra.mxu0 %v1192_v36 }
  0x4f   : > { %649 = vmatprep.subr.bf16.mxu1 %v1274_v21  ;;  %499 = vmatprep.subr.bf16.mxu0 %v1274_v21 }
  0x52   : > { %650 = vmatpush1.bf16.msra.mxu1 %v1193_v37  ;;  %500 = vmatpush1.bf16.msra.mxu0 %v1193_v37 }
  0x53   : > { %651 = vmatprep.subr.bf16.mxu1 %v1274_v21  ;;  %501 = vmatprep.subr.bf16.mxu0 %v1274_v21 }
  0x56   : > { %652 = vmatpush1.bf16.msra.mxu1 %v1194_v38  ;;  %502 = vmatpush1.bf16.msra.mxu0 %v1194_v38 }
  0x57   : > { %653 = vmatprep.subr.bf16.mxu1 %v1274_v21  ;;  %503 = vmatprep.subr.bf16.mxu0 %v1274_v21 }
  0x5a   : > { %654 = vmatpush1.bf16.msra.mxu1 %v1195_v39  ;;  %504 = vmatpush1.bf16.msra.mxu0 %v1195_v39 }
  0x5b   : > { %655 = vmatprep.subr.bf16.mxu1 %v1274_v21  ;;  %505 = vmatprep.subr.bf16.mxu0 %v1274_v21 }
  0x5e   : > { %656 = vmatpush1.bf16.msra.mxu1 %v1196_v40  ;;  %506 = vmatpush1.bf16.msra.mxu0 %v1196_v40 }
  0x5f   : > { %657 = vmatprep.subr.bf16.mxu1 %v1274_v21  ;;  %507 = vmatprep.subr.bf16.mxu0 %v1274_v21 }
  0x62   : > { %658 = vmatpush1.bf16.msra.mxu1 %v1197_v41  ;;  %508 = vmatpush1.bf16.msra.mxu0 %v1197_v41 }
  0x65   : > { %662 = vmatmul.mubr.bf16.vlgmr.msra.gmra.mrb[0].mxu1 %v611_v50  ;;  %512 = vmatmul.mubr.bf16.vlgmr.msra.gmra.mrb[0].mxu0 %v371_v51 }
  0x66   : > { %1087 = vmatprep.mubr.msk.bf16.mxu1 %vm469_vm0, %v614_v52  ;;  %1073 = vmatprep.mubr.msk.bf16.mxu0 %vm469_vm0, %v374_v53 }
  0x6d   : > { %670 = vmatmul.mubr.bf16.gmra.mrb[4].mxu1 %v613_v60  ;;  %520 = vmatmul.mubr.bf16.gmra.mrb[4].mxu0 %v373_v61 }
  0x6e   : > { %1088 = vmatprep.mubr.msk.bf16.mxu1 %vm469_vm0, %v619_v62  ;;  %1074 = vmatprep.mubr.msk.bf16.mxu0 %vm469_vm0, %v378_v63 }
  0x75   : > { %678 = vmatmul.mubr.bf16.gmra.mrb[8].mxu1 %v618_v2  ;;  %528 = vmatmul.mubr.bf16.gmra.mrb[8].mxu0 %v377_v3  ;;  %v1075_v2 = vld [vmem:[%s1596_s3] ss:$0 sm:$0xff] }
 0x138   : > { %v1490_v4 = vpop.f32.mrb[0].mxu1  ;;  %v1492_v5 = vpop.f32.mrb[0].mxu0 }
 0x139   : > { %v665_v6 = vpop.f32.mrb[1].mxu1  ;;  %v541_v7 = vrot.slane %v1492_v5, 1  ;;  %v567_v8 = vrot.slane %v1492_v5, 2  ;;  %v515_v9 = vpop.f32.mrb[1].mxu0  ;;  %v690_v10 = vrot.slane %v1490_v4, 1  ;;  %v715_v11 = vrot.slane %v1490_v4, 2 }
 0x13a   : > { %v1498_v12 = vpop.f32.mrb[2].mxu1  ;;  %v1500_v13 = vpop.f32.mrb[2].mxu0 }
 0x13b   : > { %v691_v14 = vrot.slane %v1498_v12, 1  ;;  %v716_v15 = vrot.slane %v1498_v12, 2  ;;  %v668_v16 = vpop.f32.mrb[3].mxu1  ;;  %v542_v17 = vrot.slane %v1500_v13, 1  ;;  %v568_v18 = vrot.slane %v1500_v13, 2  ;;  %v518_v19 = vpop.f32.mrb[3].mxu0 }
 0x13d   : > { %v692_v20 = vsel %vm540_vm1, %v690_v10, %v691_v14  ;;  %v717_v21 = vsel %vm566_vm2, %v715_v11, %v716_v15  ;;  %v543_v22 = vsel %vm540_vm1, %v541_v7, %v542_v17  ;;  %v569_v23 = vsel %vm566_vm2, %v567_v8, %v568_v18 }
 0x13e   : > { %699 = vrot.lane.b32.xlu0 %v692_v20, %s1275_s15 }
 0x140   : > { %v1511_v24 = vpop.f32.mrb[4].mxu1  ;;  %v1513_v25 = vpop.f32.mrb[4].mxu0 }
 0x141   : > { %v693_v26 = vrot.slane %v1511_v24, 1  ;;  %v718_v27 = vrot.slane %v1511_v24, 2  ;;  %v673_v28 = vpop.f32.mrb[5].mxu1  ;;  %v570_v29 = vrot.slane %v1513_v25, 2  ;;  %v523_v30 = vpop.f32.mrb[5].mxu0  ;;  %v544_v32 = vrot.slane %v1513_v25, 1 }
 0x142   : > { %724 = vrot.lane.b32.xlu0 %v717_v21, %s1276_s30  ;;  %v1519_v31 = vpop.f32.mrb[6].mxu1  ;;  %v524_v33 = vpop.f32.mrb[6].mxu0 }
 0x143   : > { %v695_v34 = vrot.slane %v1519_v31, 1  ;;  %v720_v35 = vrot.slane %v1519_v31, 2  ;;  %v676_v36 = vpop.f32.mrb[7].mxu1  ;;  %v719_v37 = vsel %vm566_vm2, %v716_v15, %v718_v27  ;;  %v694_v38 = vsel %vm540_vm1, %v691_v14, %v693_v26  ;;  %v526_v39 = vpop.f32.mrb[7].mxu0 }
 0x144   : > { %726 = vrot.lane.b32.xlu1 %v719_v37, %s1276_s30  ;;  %v546_v40 = vrot.slane %v524_v33, 1  ;;  %v572_v41 = vrot.slane %v524_v33, 2  ;;  %v545_v42 = vsel %vm540_vm1, %v542_v17, %v544_v32  ;;  %v571_v43 = vsel %vm566_vm2, %v568_v18, %v570_v29 }
 0x145   : > { %v696_v44 = vsel %vm540_vm1, %v693_v26, %v695_v34  ;;  %v721_v45 = vsel %vm566_vm2, %v718_v27, %v720_v35 }
 0x146   : > { %701 = vrot.lane.b32.xlu0 %v694_v38, %s1275_s15  ;;  %v547_v46 = vsel %vm540_vm1, %v544_v32, %v546_v40  ;;  %v573_v47 = vsel %vm566_vm2, %v570_v29, %v572_v41 }
 0x148   : > { %703 = vrot.lane.b32.xlu1 %v696_v44, %s1275_s15  ;;  %v679_v48 = vpop.f32.mrb[8].mxu1  ;;  %v529_v49 = vpop.f32.mrb[8].mxu0 }
 0x149   : > { %v697_v50 = vrot.slane %v679_v48, 1  ;;  %v722_v51 = vrot.slane %v679_v48, 2  ;;  %v681_v52 = vpop.f32.mrb[9].mxu1  ;;  %v548_v53 = vrot.slane %v529_v49, 1  ;;  %v574_v54 = vrot.slane %v529_v49, 2  ;;  %v531_v55 = vpop.f32.mrb[9].mxu0 }
 0x14a   : > { %728 = vrot.lane.b32.xlu0 %v721_v45, %s1276_s30  ;;  %v682_v56 = vpop.f32.mrb[10].mxu1  ;;  %v532_v57 = vpop.f32.mrb[10].mxu0 }
 0x14b   : > { %v683_v58 = vpop.f32.mrb[11].mxu1  ;;  %v698_v59 = vsel %vm540_vm1, %v695_v34, %v697_v50  ;;  %v723_v60 = vsel %vm566_vm2, %v720_v35, %v722_v51  ;;  %v549_v61 = vsel %vm540_vm1, %v546_v40, %v548_v53  ;;  %v575_v62 = vsel %vm566_vm2, %v572_v41, %v574_v54  ;;  %v533_v63 = vpop.f32.mrb[11].mxu0 }
 0x14c   : > { %705 = vrot.lane.b32.xlu1 %v698_v59, %s1275_s15 }
 0x14e   : > { %550 = vrot.lane.b32.xlu0 %v543_v22, %s1275_s15 }
 0x150   : > { %730 = vrot.lane.b32.xlu1 %v723_v60, %s1276_s30 }
 0x152   : > { %554 = vrot.lane.b32.xlu0 %v547_v46, %s1275_s15 }
 0x154   : > { %552 = vrot.lane.b32.xlu1 %v545_v42, %s1275_s15 }
 0x156   : > { %576 = vrot.lane.b32.xlu0 %v569_v23, %s1276_s30 }
 0x158   : > { %578 = vrot.lane.b32.xlu1 %v571_v43, %s1276_s30 }
 0x15a   : > { %580 = vrot.lane.b32.xlu0 %v573_v47, %s1276_s30 }
 0x15c   : > { %556 = vrot.lane.b32.xlu1 %v549_v61, %s1275_s15 }
 0x160   : > { %582 = vrot.lane.b32.xlu1 %v575_v62, %s1276_s30 }
 0x1b0   : > { %v700_v0 = vpop.permute.xlu0 %699 }
 0x1b1   : > { %v711_v1 = vadd.f32 %v700_v0, %v1490_v4 }
 0x1b4   : > { %v725_v3 = vpop.permute.xlu0 %724 }
 0x1b5   : > { %v736_v6 = vadd.f32 %v725_v3, %v711_v1 }
 0x1b6   : > { %v727_v7 = vpop.permute.xlu1 %726 }
 0x1b7   : > { %v740_v8 = vadd.f32 %v1075_v2, %v736_v6 }
 0x1b8   : > { %v702_v9 = vpop.permute.xlu0 %701 }
 0x1b9   : > { %v1089_v10 = vmul.f32 -1.442695, %v740_v8  ;;  %v712_v11 = vadd.f32 %v702_v9, %v1498_v12 }
 0x1ba   : > { %v704_v14 = vpop.permute.xlu1 %703 }
 0x1bb   : > { %1198 = vpow2.f32 %v1089_v10  ;;  %v737_v15 = vadd.f32 %v727_v7, %v712_v11  ;;  %v713_v16 = vadd.f32 %v704_v14, %v1511_v24 }
 0x1bc   : > { %v729_v17 = vpop.permute.xlu0 %728 }
 0x1bd   : > { %v741_v18 = vadd.f32 %v1075_v2, %v737_v15  ;;  %v738_v4 = vadd.f32 %v729_v17, %v713_v16 }
 0x1be   : > { %v706_v19 = vpop.permute.xlu1 %705 }
 0x1bf   : > { %v1090_v20 = vmul.f32 -1.442695, %v741_v18  ;;  %v742_v21 = vadd.f32 %v1075_v2, %v738_v4  ;;  %v714_v26 = vadd.f32 %v706_v19, %v1519_v31 }
 0x1c0   : > { %v551_v22 = vpop.permute.xlu0 %550 }
 0x1c1   : > { %1200 = vpow2.f32 %v1090_v20  ;;  %v1091_v23 = vmul.f32 -1.442695, %v742_v21  ;;  %v562_v36 = vadd.f32 %v551_v22, %v1492_v5 }
 0x1c2   : > { %v731_v27 = vpop.permute.xlu1 %730 }
 0x1c3   : > { %1202 = vpow2.f32 %v1091_v23  ;;  %v739_v28 = vadd.f32 %v731_v27, %v714_v26 }
 0x1c4   : > { %v555_v12 = vpop.permute.xlu0 %554 }
 0x1c5   : > { %v1199_v29 = vpop.eup %1198  ;;  %v743_v30 = vadd.f32 %v1075_v2, %v739_v28  ;;  %v564_v47 = vadd.f32 %v555_v12, %v1513_v25 }
 0x1c6   : > { %v756_v32 = vadd.f32 1.0, %v1199_v29  ;;  %v553_v33 = vpop.permute.xlu1 %552 }
 0x1c7   : > { %v1092_v24 = vmul.f32 -1.442695, %v743_v30  ;;  %v563_v41 = vadd.f32 %v553_v33, %v1500_v13 }
 0x1c8   : > { %1204 = vrcp.f32 %v756_v32  ;;  %v577_v34 = vpop.permute.xlu0 %576 }
 0x1c9   : > { %1206 = vpow2.f32 %v1092_v24  ;;  %v588_v31 = vadd.f32 %v577_v34, %v562_v36 }
 0x1ca   : > { %v579_v38 = vpop.permute.xlu1 %578 }
 0x1cb   : > { %v1201_v35 = vpop.eup %1200  ;;  %v598_v42 = vadd.f32 %v1075_v2, %v588_v31  ;;  %v589_v5 = vadd.f32 %v579_v38, %v563_v41 }
 0x1cc   : > { %v757_v37 = vadd.f32 1.0, %v1201_v35  ;;  %v581_v44 = vpop.permute.xlu0 %580 }
 0x1cd   : > { %v1203_v39 = vpop.eup %1202  ;;  %v590_v50 = vadd.f32 %v581_v44, %v564_v47  ;;  %v599_v13 = vadd.f32 %v1075_v2, %v589_v5 }
 0x1ce   : > { %1208 = vrcp.f32 %v757_v37  ;;  %v758_v40 = vadd.f32 1.0, %v1203_v39  ;;  %v557_v45 = vpop.permute.xlu1 %556 }
 0x1cf   : > { %v600_v54 = vadd.f32 %v1075_v2, %v590_v50 }
 0x1d0   : > { %1210 = vrcp.f32 %v758_v40 }
 0x1d2   : > { %v1205_v43 = vpop.eup %1204  ;;  %v583_v52 = vpop.permute.xlu1 %582 }
 0x1d3   : > { %v1207_v46 = vpop.eup %1206  ;;  %v768_v48 = vmul.f32 %v1205_v43, %v598_v42 }
 0x1d4   : > { %v759_v49 = vadd.f32 1.0, %v1207_v46 }
 0x1d5   : > { %773 = vst.msk [vmem:[%s1561_s24] sm:$0xff] %vm772_vm3, %v768_v48 }
 0x1d6   : > { %1212 = vrcp.f32 %v759_v49 }
 0x1d8   : > { %v1209_v51 = vpop.eup %1208 }
 0x1d9   : > { %v769_v53 = vmul.f32 %v1209_v51, %v599_v13 }
 0x1da   : > { %v1211_v55 = vpop.eup %1210  ;;  %783 = sbr.rel (!%p1341_p6) target bundleno = 491 (0x1eb), region = 86 }
 0x1db   : > { %774 = vst.msk [vmem:[%s1561_s24 + $0x8] sm:$0xff] %vm772_vm3, %v769_v53  ;;  %v770_v25 = vmul.f32 %v1211_v55, %v600_v54 }
 0x1dd   : > { %775 = vst.msk [vmem:[%s1561_s24 + $0x10] sm:$0xff] %vm772_vm3, %v770_v25 }
 0x1e0   : > { %v1213_v56 = vpop.eup %1212 }
 0x1e1 LB: >> { %v862_v57 = vld [vmem:[%s1561_s24] sm:$0xff]  ;;  %s856_s6 = sadd.s32 1, %s1272_s6   ;;  %s1272_s6 = sphi %s1270_s6, %s856_s6  }
 0x1e2   : >> { %v864_v58 = vld [vmem:[%s1561_s24 + $0x8] sm:$0xff]  ;;  %863 = vst [vmem:[%s791_s5] sm:$0xff] %v862_v57  ;;  %p855_p11 = scmp.ge.s32.totalorder %s856_s6, 1 }
 0x1e3   : >> { %865 = vst [vmem:[%s791_s5 + $0x8] sm:$0xff] %v864_v58 }
 0x1e4   : >> { %v866_v59 = vld [vmem:[%s1561_s24 + $0x10] sm:$0xff]  ;;  %858 = sbr.rel (!%p855_p11) target bundleno = 481 (0x1e1), region = 187 }
 0x1e5   : >> { %867 = vst [vmem:[%s791_s5 + $0x10] sm:$0xff] %v866_v59 }
 0x1eb PF: > { %s14_s19 = sadd.s32 1, %s1268_s19   ;;  %s1600_s15 = smov %s1256_s16 }
 0x1ec   : > { %p11_p12 = scmp.ge.s32.totalorder %s14_s19, 4   ;;  %s1601_s16 = smov %s1346_s26 }
 0x1ed   : > { %s1602_s17 = smov %s1264_s18  ;;  %s1603_s18 = smov %s1605_s20 }
 0x1ee   :  { %13 = sbr.rel (!%p11_p12) target bundleno = 3 (0x3), region = 209 }

</bundles_post_ra>
